<compile_context>
chip_gen: v7x
topology: tpu7x:2x2x1
jax: 0.10.0
libtpu: 0.0.40
codegen_flags: <defaults>
</compile_context>

<pallas_src>
import jax
import jax.numpy as jnp
from jax import lax
from jax.experimental import pallas as pl
from jax.experimental.pallas import tpu as pltpu

BN_EPS = 1e-5


def _round_up(x, m):
    return (x + m - 1) // m * m


def _choose_tiles(n):
    """Return (tm, tk, n_pad). Large A tiles (>=1 MiB int8 per step) when N is big."""
    if n <= 1024:
        t = _round_up(n, 128)
        return t, t, t
    tm = 512
    tk = 4096 if n >= 4096 else _round_up(n, 512)
    n_pad = _round_up(n, tk)
    return tm, tk, n_pad


# --------------------------------------------------------------------------
# Kernel 1: tiled GIN aggregation + 2-layer MLP + partial BatchNorm stats
# --------------------------------------------------------------------------
def gin_mlp_layer(a_i8, z_bf16, mask, w1, b1, w2, b2, *, eps, tm, tk):
    n_pad, d_in = z_bf16.shape
    hid = w1.shape[1]
    n_i = n_pad // tm
    n_k = n_pad // tk

    def kernel(a_ref, z_ref, zrow_ref, m_ref, w1_ref, b1_ref, w2_ref, b2_ref,
               h_ref, ssum_ref, ssq_ref, acc_ref):
        # All program_id / num_programs reads stay at the kernel top level
        # (never inside pl.when bodies) so cond branches contain none of them.
        k = pl.program_id(1)
        last_k = pl.num_programs(1) - 1
        col0 = k * tk

        @pl.when(k == 0)
        def _init():
            acc_ref[...] = jnp.zeros_like(acc_ref)

        # Dominant O(N^2) work: int8 A tile (HBM stream halved) -> bf16 in VMEM,
        # bf16 MXU matmul against the resident z slice, f32 accumulation.
        a_bf = a_ref[...].astype(jnp.float32).astype(jnp.bfloat16)
        acc_ref[...] += jnp.dot(a_bf, z_ref[pl.ds(col0, tk), :],
                                preferred_element_type=jnp.float32)

        @pl.when(k == last_k)
        def _fin():
            # exact (1+eps)*z self term, added in f32 (eps not forced into int8/bf16)
            agg = acc_ref[...] + (1.0 + eps) * zrow_ref[...].astype(jnp.float32)
            h = jnp.dot(agg, w1_ref[...],
                        preferred_element_type=jnp.float32) + b1_ref[...]
            h = jnp.maximum(h, 0.0)
            h = jnp.dot(h, w2_ref[...],
                        preferred_element_type=jnp.float32) + b2_ref[...]
            h = jnp.maximum(h, 0.0)                      # outer F.relu
            h_ref[...] = h
            # one-pass partial BatchNorm stats; padded rows masked via m_ref
            hm = h * m_ref[...]
            ssum_ref[...] = jnp.sum(hm, axis=0, keepdims=True).reshape(1, 1, hid)
            ssq_ref[...] = jnp.sum(hm * hm, axis=0, keepdims=True).reshape(1, 1, hid)

    return pl.pallas_call(
        kernel,
        out_shape=(
            jax.ShapeDtypeStruct((n_pad, hid), jnp.float32),
            jax.ShapeDtypeStruct((n_i, 1, hid), jnp.float32),
            jax.ShapeDtypeStruct((n_i, 1, hid), jnp.float32),
        ),
        grid=(n_i, n_k),
        in_specs=[
            pl.BlockSpec((tm, tk), lambda i, k: (i, k)),        # A tile (int8, streamed)
            pl.BlockSpec((n_pad, d_in), lambda i, k: (0, 0)),   # z resident in VMEM
            pl.BlockSpec((tm, d_in), lambda i, k: (i, 0)),      # z rows of this row tile
            pl.BlockSpec((tm, 1), lambda i, k: (i, 0)),         # row-validity mask
            pl.BlockSpec((d_in, hid), lambda i, k: (0, 0)),     # W1 (resident)
            pl.BlockSpec((1, hid), lambda i, k: (0, 0)),        # b1
            pl.BlockSpec((hid, hid), lambda i, k: (0, 0)),      # W2
            pl.BlockSpec((1, hid), lambda i, k: (0, 0)),        # b2
        ],
        out_specs=[
            pl.BlockSpec((tm, hid), lambda i, k: (i, 0)),
            pl.BlockSpec((1, 1, hid), lambda i, k: (i, 0, 0)),
            pl.BlockSpec((1, 1, hid), lambda i, k: (i, 0, 0)),
        ],
        scratch_shapes=[pltpu.VMEM((tm, d_in), jnp.float32)],
        compiler_params=pltpu.CompilerParams(
            dimension_semantics=("parallel", "arbitrary")),
    )(a_i8, z_bf16, z_bf16, mask, w1, b1, w2, b2)


# --------------------------------------------------------------------------
# Kernel 2: BatchNorm apply + per-tile partial global_add_pool (parallel grid)
# --------------------------------------------------------------------------
def bn_pool_layer(h, scale, shift, mask, p_bf16, *, tm):
    n_pad, hid = h.shape
    g = p_bf16.shape[0]
    n_i = n_pad // tm

    def kernel(h_ref, sc_ref, sh_ref, m_ref, p_ref, z_ref, pool_ref):
        z = (h_ref[...] * sc_ref[...] + sh_ref[...]) * m_ref[...]
        z_ref[...] = z
        # partial pool for this row tile; reduced across tiles in JAX so the
        # grid axis stays "parallel" (no revisited accumulator block).
        pool = jnp.dot(p_ref[...].astype(jnp.float32), z,
                       preferred_element_type=jnp.float32)
        pool_ref[...] = pool.reshape(1, g, hid)

    return pl.pallas_call(
        kernel,
        out_shape=(
            jax.ShapeDtypeStruct((n_pad, hid), jnp.float32),
            jax.ShapeDtypeStruct((n_i, g, hid), jnp.float32),
        ),
        grid=(n_i,),
        in_specs=[
            pl.BlockSpec((tm, hid), lambda i: (i, 0)),
            pl.BlockSpec((1, hid), lambda i: (0, 0)),
            pl.BlockSpec((1, hid), lambda i: (0, 0)),
            pl.BlockSpec((tm, 1), lambda i: (i, 0)),
            pl.BlockSpec((g, tm), lambda i: (0, i)),            # bf16 one-hot P tile
        ],
        out_specs=[
            pl.BlockSpec((tm, hid), lambda i: (i, 0)),
            pl.BlockSpec((1, g, hid), lambda i: (i, 0, 0)),
        ],
        compiler_params=pltpu.CompilerParams(
            dimension_semantics=("parallel",)),
    )(h, scale, shift, mask, p_bf16)


# --------------------------------------------------------------------------
# parameters / forward wrapper
# --------------------------------------------------------------------------
def init_gconv_params(key, input_dim, hidden_dim, num_layers):
    """Deterministic synthetic parameters matching the PyTorch module's shapes."""
    params = []
    for i in range(num_layers):
        in_dim = input_dim if i == 0 else hidden_dim
        key, k1, k2, k3, k4 = jax.random.split(key, 5)
        s1 = 1.0 / jnp.sqrt(jnp.float32(in_dim))
        s2 = 1.0 / jnp.sqrt(jnp.float32(hidden_dim))
        params.append(dict(
            w1=jax.random.uniform(k1, (in_dim, hidden_dim), jnp.float32, -s1, s1),
            b1=jax.random.uniform(k2, (1, hidden_dim), jnp.float32, -s1, s1),
            w2=jax.random.uniform(k3, (hidden_dim, hidden_dim), jnp.float32, -s2, s2),
            b2=jax.random.uniform(k4, (1, hidden_dim), jnp.float32, -s2, s2),
            gamma=jnp.ones((1, hidden_dim), jnp.float32),   # BatchNorm1d defaults
            beta=jnp.zeros((1, hidden_dim), jnp.float32),
        ))
    # NOTE: the PyTorch module also builds `self.project`, but forward() never
    # uses it, so it is intentionally not materialized here.
    return params


def gconv_forward(params, x, edge_index, batch, num_graphs, eps=0.0):
    n = x.shape[0]
    tm, tk, n_pad = _choose_tiles(n)

    # Off-diagonal adjacency counts built in ONE pass, directly in int8.
    # TODO(synk): int8 assumes edge multiplicities <= 127 (true for simple graphs).
    ones = jnp.ones((edge_index.shape[1],), jnp.int8)
    a_i8 = jnp.zeros((n_pad, n_pad), jnp.int8)
    a_i8 = a_i8.at[edge_index[1], edge_index[0]].add(ones)

    # row-validity mask (1.0 for real nodes, 0.0 for padding)
    mask = (jnp.arange(n_pad) < n).astype(jnp.float32).reshape(n_pad, 1)

    # one-hot pooling matrix, bf16 (exact); zero columns for padded nodes
    p = (batch[None, :] == jnp.arange(num_graphs)[:, None]).astype(jnp.bfloat16)
    p_bf16 = jnp.pad(p, ((0, 0), (0, n_pad - n)))

    z = jnp.pad(x.astype(jnp.float32), ((0, n_pad - n), (0, 0)))
    zs, gs = [], []
    for lp in params:
        h, ssum, ssq = gin_mlp_layer(
            a_i8, z.astype(jnp.bfloat16), mask,
            lp["w1"], lp["b1"], lp["w2"], lp["b2"],
            eps=eps, tm=tm, tk=tk)
        # finalize training-mode BatchNorm stats (biased variance) across tiles
        # TODO(synk): one-pass E[x^2]-mean^2 can cancel for huge activations; a
        # shifted/Welford accumulation would be more robust.
        s = jnp.sum(ssum[:, 0, :], axis=0)
        q = jnp.sum(ssq[:, 0, :], axis=0)
        mean = s / n
        var = jnp.maximum(q / n - mean * mean, 0.0)
        scale = lp["gamma"] * lax.rsqrt(var + BN_EPS)
        shift = lp["beta"] - mean * scale
        z, pool_part = bn_pool_layer(h, scale, shift, mask, p_bf16, tm=tm)
        zs.append(z[:n])
        gs.append(jnp.sum(pool_part, axis=0))
    # TODO(synk): feature dims (8/32) are below 128 lanes; padding them would be
    # lane-dense but the kernel is HBM-bound on A so it is left as-is.
    return jnp.concatenate(zs, axis=1), jnp.concatenate(gs, axis=1)


# pure-JAX reference (mirrors the bf16 cast of z before aggregation)
def gconv_reference(params, x, edge_index, batch, num_graphs, eps=0.0):
    hi = jax.lax.Precision.HIGHEST
    n = x.shape[0]
    a = jnp.zeros((n, n), jnp.float32).at[edge_index[1], edge_index[0]].add(1.0)
    a = a + (1.0 + eps) * jnp.eye(n, dtype=jnp.float32)
    p = (batch[None, :] == jnp.arange(num_graphs)[:, None]).astype(jnp.float32)
    z = x.astype(jnp.float32)
    zs, gs = [], []
    for lp in params:
        zb = z.astype(jnp.bfloat16).astype(jnp.float32)
        agg = jnp.dot(a, zb, precision=hi)
        h = jnp.maximum(jnp.dot(agg, lp["w1"], precision=hi) + lp["b1"], 0.0)
        h = jnp.maximum(jnp.dot(h, lp["w2"], precision=hi) + lp["b2"], 0.0)
        mean = jnp.mean(h, axis=0, keepdims=True)
        var = jnp.mean((h - mean) ** 2, axis=0, keepdims=True)
        z = (h - mean) * lax.rsqrt(var + BN_EPS) * lp["gamma"] + lp["beta"]
        zs.append(z)
        gs.append(jnp.dot(p, z, precision=hi))
    return jnp.concatenate(zs, axis=1), jnp.concatenate(gs, axis=1)


# --------------------------------------------------------------------------
# demo
# --------------------------------------------------------------------------
if __name__ == "__main__":
    INPUT_DIM, HIDDEN_DIM, NUM_LAYERS = 8, 32, 2
    NUM_NODES, NUM_EDGES, NUM_GRAPHS = 16, 40, 2

    key = jax.random.PRNGKey(0)
    key, kx, ke = jax.random.split(key, 3)

    x = jax.random.normal(kx, (NUM_NODES, INPUT_DIM), jnp.float32)
    edge_index = jax.random.randint(ke, (2, NUM_EDGES), 0, NUM_NODES, jnp.int32)
    batch = jnp.concatenate([
        jnp.zeros((NUM_NODES // 2,), jnp.int32),
        jnp.ones((NUM_NODES - NUM_NODES // 2,), jnp.int32),
    ])

    params = init_gconv_params(key, INPUT_DIM, HIDDEN_DIM, NUM_LAYERS)

    z, g = gconv_forward(params, x, edge_index, batch, NUM_GRAPHS)
    jax.block_until_ready((z, g))

    assert z.shape == (NUM_NODES, HIDDEN_DIM * NUM_LAYERS)
    assert g.shape == (NUM_GRAPHS, HIDDEN_DIM * NUM_LAYERS)

    z_ref, g_ref = gconv_reference(params, x, edge_index, batch, NUM_GRAPHS)
    assert jnp.allclose(z, z_ref, atol=5e-2, rtol=5e-2)
    assert jnp.allclose(g, g_ref, atol=5e-2, rtol=5e-2)
    print("KERNEL_OK")
</pallas_src>

<mosaic_0001>
module attributes {stable_mosaic.version = 11 : i64} {
  func.func @kernel(%arg0: i32, %arg1: i32, %arg2: memref<128x128xi8, #tpu.memory_space<vmem>>, %arg3: memref<128x8xbf16, #tpu.memory_space<vmem>>, %arg4: memref<128x8xbf16, #tpu.memory_space<vmem>>, %arg5: memref<128x1xf32, #tpu.memory_space<vmem>>, %arg6: memref<8x32xf32, #tpu.memory_space<vmem>>, %arg7: memref<1x32xf32, #tpu.memory_space<vmem>>, %arg8: memref<32x32xf32, #tpu.memory_space<vmem>>, %arg9: memref<1x32xf32, #tpu.memory_space<vmem>>, %arg10: memref<128x32xf32, #tpu.memory_space<vmem>>, %arg11: memref<1x1x32xf32, #tpu.memory_space<vmem>>, %arg12: memref<1x1x32xf32, #tpu.memory_space<vmem>>, %arg13: memref<128x8xf32, #tpu.memory_space<vmem>>) attributes {dimension_semantics = [#tpu.dimension_semantics<parallel>, #tpu.dimension_semantics<arbitrary>], iteration_bounds = array<i64: 1, 1>, scalar_prefetch = 0 : i64, scratch_operands = 1 : i64, tpu.core_type = #tpu.core_type<tc>, window_params = [{transform_indices = @transform_0, window_bounds = array<i64: 128, 128>}, {pipeline_mode = #tpu.pipeline_mode<synchronous>, transform_indices = @transform_1, window_bounds = array<i64: 128, 8>}, {transform_indices = @transform_2, window_bounds = array<i64: 128, 8>}, {transform_indices = @transform_3, window_bounds = array<i64: 128, 1>}, {pipeline_mode = #tpu.pipeline_mode<synchronous>, transform_indices = @transform_4, window_bounds = array<i64: 8, 32>}, {pipeline_mode = #tpu.pipeline_mode<synchronous>, transform_indices = @transform_5, window_bounds = array<i64: 1, 32>}, {pipeline_mode = #tpu.pipeline_mode<synchronous>, transform_indices = @transform_6, window_bounds = array<i64: 32, 32>}, {pipeline_mode = #tpu.pipeline_mode<synchronous>, transform_indices = @transform_7, window_bounds = array<i64: 1, 32>}, {transform_indices = @transform_8, window_bounds = array<i64: 128, 32>}, {transform_indices = @transform_9, window_bounds = array<i64: 1, 1, 32>}, {transform_indices = @transform_10, window_bounds = array<i64: 1, 1, 32>}]} {
    %c128_i32 = arith.constant 128 : i32
    %0 = arith.muli %arg1, %c128_i32 : i32
    %c0_i32 = arith.constant 0 : i32
    %1 = arith.cmpi eq, %arg1, %c0_i32 : i32
    %2 = arith.extui %1 : i1 to i32
    %c0_i32_0 = arith.constant 0 : i32
    %3 = arith.cmpi ne, %2, %c0_i32_0 : i32
    scf.if %3 {
      %cst_9 = arith.constant 0.000000e+00 : f32
      %16 = vector.broadcast %cst_9 : f32 to vector<128x8xf32>
      %c0_10 = arith.constant 0 : index
      %c0_11 = arith.constant 0 : index
      %17 = vector.load %arg13[%c0_10, %c0_11] : memref<128x8xf32, #tpu.memory_space<vmem>>, vector<128x8xf32>
      tpu.vector_store %arg13[%c0_10, %c0_11], %16 {strides = array<i32>} : memref<128x8xf32, #tpu.memory_space<vmem>>, vector<128x8xf32>,
    } else {
    }
    %c0 = arith.constant 0 : index
    %c0_1 = arith.constant 0 : index
    %4 = vector.load %arg2[%c0, %c0_1] : memref<128x128xi8, #tpu.memory_space<vmem>>, vector<128x128xi8>
    %5 = arith.sitofp %4 : vector<128x128xi8> to vector<128x128xf32>
    %6 = arith.truncf %5 : vector<128x128xf32> to vector<128x128xbf16>
    %c0_2 = arith.constant 0 : index
    %c0_3 = arith.constant 0 : index
    %7 = vector.load %arg13[%c0_2, %c0_3] : memref<128x8xf32, #tpu.memory_space<vmem>>, vector<128x8xf32>
    %8 = arith.index_cast %0 : i32 to index
    %c0_4 = arith.constant 0 : index
    %9 = vector.load %arg3[%8, %c0_4] : memref<128x8xbf16, #tpu.memory_space<vmem>>, vector<128x8xbf16>
    %cst = arith.constant dense<0.000000e+00> : vector<128x8xf32>
    %10 = tpu.matmul %6, %9, %cst {dimension_numbers = #tpu.dot_dimension_numbers<[1], [0], [0], [1], [0, 0, 1, 1], [], []>} : vector<128x128xbf16>, vector<128x8xbf16>, vector<128x8xf32> -> vector<128x8xf32>
    %11 = arith.addf %7, %10 : vector<128x8xf32>
    %c0_5 = arith.constant 0 : index
    %c0_6 = arith.constant 0 : index
    %12 = vector.load %arg13[%c0_5, %c0_6] : memref<128x8xf32, #tpu.memory_space<vmem>>, vector<128x8xf32>
    tpu.vector_store %arg13[%c0_5, %c0_6], %11 {strides = array<i32>} : memref<128x8xf32, #tpu.memory_space<vmem>>, vector<128x8xf32>,
    %c0_i32_7 = arith.constant 0 : i32
    %13 = arith.cmpi eq, %arg1, %c0_i32_7 : i32
    %14 = arith.extui %13 : i1 to i32
    %c0_i32_8 = arith.constant 0 : i32
    %15 = arith.cmpi ne, %14, %c0_i32_8 : i32
    scf.if %15 {
      %c0_9 = arith.constant 0 : index
      %c0_10 = arith.constant 0 : index
      %16 = vector.load %arg13[%c0_9, %c0_10] : memref<128x8xf32, #tpu.memory_space<vmem>>, vector<128x8xf32>
      %c0_11 = arith.constant 0 : index
      %c0_12 = arith.constant 0 : index
      %17 = vector.load %arg4[%c0_11, %c0_12] : memref<128x8xbf16, #tpu.memory_space<vmem>>, vector<128x8xbf16>
      %18 = arith.extf %17 : vector<128x8xbf16> to vector<128x8xf32>
      %cst_13 = arith.constant 1.000000e+00 : f32
      %19 = vector.broadcast %cst_13 : f32 to vector<128x8xf32>
      %20 = arith.mulf %19, %18 : vector<128x8xf32>
      %21 = arith.addf %16, %20 : vector<128x8xf32>
      %c0_14 = arith.constant 0 : index
      %c0_15 = arith.constant 0 : index
      %22 = vector.load %arg6[%c0_14, %c0_15] : memref<8x32xf32, #tpu.memory_space<vmem>>, vector<8x32xf32>
      %cst_16 = arith.constant dense<0.000000e+00> : vector<128x32xf32>
      %23 = tpu.matmul %21, %22, %cst_16 {dimension_numbers = #tpu.dot_dimension_numbers<[1], [0], [0], [1], [0, 0, 1, 1], [], []>} : vector<128x8xf32>, vector<8x32xf32>, vector<128x32xf32> -> vector<128x32xf32>
      %c0_17 = arith.constant 0 : index
      %c0_18 = arith.constant 0 : index
      %24 = vector.load %arg7[%c0_17, %c0_18] : memref<1x32xf32, #tpu.memory_space<vmem>>, vector<1x32xf32>
      %25 = vector.broadcast %24 : vector<1x32xf32> to vector<128x32xf32>
      %26 = arith.addf %23, %25 : vector<128x32xf32>
      %cst_19 = arith.constant 0.000000e+00 : f32
      %27 = vector.broadcast %cst_19 : f32 to vector<128x32xf32>
      %28 = arith.maximumf %26, %27 : vector<128x32xf32>
      %c0_20 = arith.constant 0 : index
      %c0_21 = arith.constant 0 : index
      %29 = vector.load %arg8[%c0_20, %c0_21] : memref<32x32xf32, #tpu.memory_space<vmem>>, vector<32x32xf32>
      %cst_22 = arith.constant dense<0.000000e+00> : vector<128x32xf32>
      %30 = tpu.matmul %28, %29, %cst_22 {dimension_numbers = #tpu.dot_dimension_numbers<[1], [0], [0], [1], [0, 0, 1, 1], [], []>} : vector<128x32xf32>, vector<32x32xf32>, vector<128x32xf32> -> vector<128x32xf32>
      %c0_23 = arith.constant 0 : index
      %c0_24 = arith.constant 0 : index
      %31 = vector.load %arg9[%c0_23, %c0_24] : memref<1x32xf32, #tpu.memory_space<vmem>>, vector<1x32xf32>
      %32 = vector.broadcast %31 : vector<1x32xf32> to vector<128x32xf32>
      %33 = arith.addf %30, %32 : vector<128x32xf32>
      %cst_25 = arith.constant 0.000000e+00 : f32
      %34 = vector.broadcast %cst_25 : f32 to vector<128x32xf32>
      %35 = arith.maximumf %33, %34 : vector<128x32xf32>
      %c0_26 = arith.constant 0 : index
      %c0_27 = arith.constant 0 : index
      %36 = vector.load %arg10[%c0_26, %c0_27] : memref<128x32xf32, #tpu.memory_space<vmem>>, vector<128x32xf32>
      tpu.vector_store %arg10[%c0_26, %c0_27], %35 {strides = array<i32>} : memref<128x32xf32, #tpu.memory_space<vmem>>, vector<128x32xf32>,
      %c0_28 = arith.constant 0 : index
      %c0_29 = arith.constant 0 : index
      %37 = vector.load %arg5[%c0_28, %c0_29] : memref<128x1xf32, #tpu.memory_space<vmem>>, vector<128x1xf32>
      %38 = vector.broadcast %37 : vector<128x1xf32> to vector<128x32xf32>
      %39 = arith.mulf %35, %38 : vector<128x32xf32>
      %cst_30 = arith.constant dense<0.000000e+00> : vector<32xf32>
      %40 = vector.multi_reduction <add>, %39, %cst_30 [0] : vector<128x32xf32> to vector<32xf32>
      %41 = vector.shape_cast %40 : vector<32xf32> to vector<1x32xf32>
      %42 = vector.shape_cast %41 : vector<1x32xf32> to vector<1x1x32xf32>
      %c0_31 = arith.constant 0 : index
      %c0_32 = arith.constant 0 : index
      %c0_33 = arith.constant 0 : index
      %43 = vector.load %arg11[%c0_31, %c0_32, %c0_33] : memref<1x1x32xf32, #tpu.memory_space<vmem>>, vector<1x1x32xf32>
      tpu.vector_store %arg11[%c0_31, %c0_32, %c0_33], %42 {strides = array<i32>} : memref<1x1x32xf32, #tpu.memory_space<vmem>>, vector<1x1x32xf32>,
      %44 = arith.mulf %39, %39 : vector<128x32xf32>
      %cst_34 = arith.constant dense<0.000000e+00> : vector<32xf32>
      %45 = vector.multi_reduction <add>, %44, %cst_34 [0] : vector<128x32xf32> to vector<32xf32>
      %46 = vector.shape_cast %45 : vector<32xf32> to vector<1x32xf32>
      %47 = vector.shape_cast %46 : vector<1x32xf32> to vector<1x1x32xf32>
      %c0_35 = arith.constant 0 : index
      %c0_36 = arith.constant 0 : index
      %c0_37 = arith.constant 0 : index
      %48 = vector.load %arg12[%c0_35, %c0_36, %c0_37] : memref<1x1x32xf32, #tpu.memory_space<vmem>>, vector<1x1x32xf32>
      tpu.vector_store %arg12[%c0_35, %c0_36, %c0_37], %47 {strides = array<i32>} : memref<1x1x32xf32, #tpu.memory_space<vmem>>, vector<1x1x32xf32>,
    } else {
    }
    return
  }
  func.func @transform_0(%arg0: i32, %arg1: i32) -> (i32, i32) {
    %c0_i32 = arith.constant 0 : i32
    return %arg0, %arg1 : i32, i32
  }
  func.func @transform_1(%arg0: i32, %arg1: i32) -> (i32, i32) {
    %c0_i32 = arith.constant 0 : i32
    %c0_i32_0 = arith.constant 0 : i32
    %c0_i32_1 = arith.constant 0 : i32
    return %c0_i32, %c0_i32_0 : i32, i32
  }
  func.func @transform_2(%arg0: i32, %arg1: i32) -> (i32, i32) {
    %c0_i32 = arith.constant 0 : i32
    %c0_i32_0 = arith.constant 0 : i32
    return %arg0, %c0_i32 : i32, i32
  }
  func.func @transform_3(%arg0: i32, %arg1: i32) -> (i32, i32) {
    %c0_i32 = arith.constant 0 : i32
    %c0_i32_0 = arith.constant 0 : i32
    return %arg0, %c0_i32 : i32, i32
  }
  func.func @transform_4(%arg0: i32, %arg1: i32) -> (i32, i32) {
    %c0_i32 = arith.constant 0 : i32
    %c0_i32_0 = arith.constant 0 : i32
    %c0_i32_1 = arith.constant 0 : i32
    return %c0_i32, %c0_i32_0 : i32, i32
  }
  func.func @transform_5(%arg0: i32, %arg1: i32) -> (i32, i32) {
    %c0_i32 = arith.constant 0 : i32
    %c0_i32_0 = arith.constant 0 : i32
    %c0_i32_1 = arith.constant 0 : i32
    return %c0_i32, %c0_i32_0 : i32, i32
  }
  func.func @transform_6(%arg0: i32, %arg1: i32) -> (i32, i32) {
    %c0_i32 = arith.constant 0 : i32
    %c0_i32_0 = arith.constant 0 : i32
    %c0_i32_1 = arith.constant 0 : i32
    return %c0_i32, %c0_i32_0 : i32, i32
  }
  func.func @transform_7(%arg0: i32, %arg1: i32) -> (i32, i32) {
    %c0_i32 = arith.constant 0 : i32
    %c0_i32_0 = arith.constant 0 : i32
    %c0_i32_1 = arith.constant 0 : i32
    return %c0_i32, %c0_i32_0 : i32, i32
  }
  func.func @transform_8(%arg0: i32, %arg1: i32) -> (i32, i32) {
    %c0_i32 = arith.constant 0 : i32
    %c0_i32_0 = arith.constant 0 : i32
    return %arg0, %c0_i32 : i32, i32
  }
  func.func @transform_9(%arg0: i32, %arg1: i32) -> (i32, i32, i32) {
    %c0_i32 = arith.constant 0 : i32
    %c0_i32_0 = arith.constant 0 : i32
    %c0_i32_1 = arith.constant 0 : i32
    return %arg0, %c0_i32, %c0_i32_0 : i32, i32, i32
  }
  func.func @transform_10(%arg0: i32, %arg1: i32) -> (i32, i32, i32) {
    %c0_i32 = arith.constant 0 : i32
    %c0_i32_0 = arith.constant 0 : i32
    %c0_i32_1 = arith.constant 0 : i32
    return %arg0, %c0_i32, %c0_i32_0 : i32, i32, i32
  }
}

</mosaic_0001>

<bundles_post_ra>
// kernel: tpu_custom_call.1
= control target key start
LH: loop header
LB: loop body
LE: loop exit
PB: predicated region body
PF: predicated region fallthrough
CT: control target
= control target key end

     0   :  { %16 = vsyncpa [#allocation4], 0  ;;  %vm40_vm0 = vcmask 64512   ;;  %v1337_v2 = vmov 0.0   ;;  %s1737_s0 = inlined_call_operand.vmem [shape: s8[128,128], index: 0, kind: input, shape index: {}]   ;;  %s1738_s1 = inlined_call_operand.vmem [shape: bf16[128,8], index: 1, kind: input, shape index: {}]   ;;  %s1739_s2 = inlined_call_operand.vmem [shape: bf16[128,8], index: 2, kind: input, shape index: {}]   ;;  %s1740_s3 = inlined_call_operand.vmem [shape: f32[128,1], index: 3, kind: input, shape index: {}]   ;;  %s1741_s4 = inlined_call_operand.vmem [shape: f32[8,32], index: 4, kind: input, shape index: {}]   ;;  %s1742_s5 = inlined_call_operand.vmem [shape: f32[1,32], index: 5, kind: input, shape index: {}]   ;;  %s1743_s6 = inlined_call_operand.vmem [shape: f32[32,32], index: 6, kind: input, shape index: {}]   ;;  %s1744_s7 = inlined_call_operand.vmem [shape: f32[1,32], index: 7, kind: input, shape index: {}]   ;;  %s1745_s8 = inlined_call_operand.vmem [shape: f32[128,32], index: 8, kind: output, shape index: {0}]   ;;  %s1746_s9 = inlined_call_operand.hbm [shape: f32[1,1,32], index: 9, kind: output, shape index: {1}]   ;;  %s1747_s10 = inlined_call_operand.hbm [shape: f32[1,1,32], index: 10, kind: output, shape index: {2}]  }
   0x1   :  { %v1281_v0 = vld [vmem:[%s1738_s1] sm:$0xff]   ;;  %v1282_v1 = vld [vmem:[%s1738_s1 + $0x8] sm:$0xff]   ;;  %43 = vst.msk [vmem:[#allocation2 + $0x10] sm:$0xff] %vm40_vm0, %v1337_v2  ;;  %41 = vst.msk [vmem:[#allocation2] sm:$0xff] %vm40_vm0, %v1337_v2 }
   0x2   :  { %1177 = vmatprep.subr.bf16.mxu0 %v1281_v0  ;;  %42 = vst.msk [vmem:[#allocation2 + $0x8] sm:$0xff] %vm40_vm0, %v1337_v2  ;;  %44 = vst.msk [vmem:[#allocation2 + $0x18] sm:$0xff] %vm40_vm0, %v1337_v2  ;;  %v1283_v3 = vld [vmem:[%s1738_s1 + $0x10] sm:$0xff]   ;;  %v1284_v4 = vld [vmem:[%s1738_s1 + $0x18] sm:$0xff]  }
   0x3   :  { %45 = vst.msk [vmem:[#allocation2 + $0x20] sm:$0xff] %vm40_vm0, %v1337_v2  ;;  %46 = vst.msk [vmem:[#allocation2 + $0x28] sm:$0xff] %vm40_vm0, %v1337_v2  ;;  %1178 = vmatpush3.bf16.msra.mxu0 %v1281_v0  ;;  %v57_v5 = vld [vmem:[%s1737_s0] sm:$0xff] }
   0x4   :  { %47 = vst.msk [vmem:[#allocation2 + $0x30] sm:$0xff] %vm40_vm0, %v1337_v2  ;;  %48 = vst.msk [vmem:[#allocation2 + $0x38] sm:$0xff] %vm40_vm0, %v1337_v2  ;;  %1179 = vmatprep.subr.bf16.mxu0 %v1282_v1  ;;  %v61_v6 = vunpack.c.l.s8.bf16 %v57_v5 }
   0x5   :  { %49 = vst.msk [vmem:[#allocation2 + $0x40] sm:$0xff] %vm40_vm0, %v1337_v2  ;;  %50 = vst.msk [vmem:[#allocation2 + $0x48] sm:$0xff] %vm40_vm0, %v1337_v2 }
   0x6   :  { %51 = vst.msk [vmem:[#allocation2 + $0x50] sm:$0xff] %vm40_vm0, %v1337_v2  ;;  %52 = vst.msk [vmem:[#allocation2 + $0x58] sm:$0xff] %vm40_vm0, %v1337_v2 }
   0x7   :  { %53 = vst.msk [vmem:[#allocation2 + $0x60] sm:$0xff] %vm40_vm0, %v1337_v2  ;;  %54 = vst.msk [vmem:[#allocation2 + $0x68] sm:$0xff] %vm40_vm0, %v1337_v2  ;;  %1180 = vmatpush3.bf16.msra.mxu0 %v1282_v1 }
   0x8   :  { %55 = vst.msk [vmem:[#allocation2 + $0x70] sm:$0xff] %vm40_vm0, %v1337_v2  ;;  %56 = vst.msk [vmem:[#allocation2 + $0x78] sm:$0xff] %vm40_vm0, %v1337_v2  ;;  %1181 = vmatprep.subr.bf16.mxu0 %v1283_v3 }
   0x9   :  { %17 = vsyncpa [#allocation6], 0  ;;  %1193 = vmatprep.mubr.bf16.mxu0 %v61_v6  ;;  %v1285_v7 = vld [vmem:[%s1738_s1 + $0x20] sm:$0xff]   ;;  %v1286_v8 = vld [vmem:[%s1738_s1 + $0x28] sm:$0xff]   ;;  %v62_v12 = vunpack.c.h.s8.bf16 %v57_v5  ;;  %vm578_vm1 = vcmask 261120   ;;  %vm953_vm2 = vcmask 253952  }
   0xa   :  { %v1287_v9 = vld [vmem:[%s1738_s1 + $0x30] sm:$0xff]   ;;  %v1288_v10 = vld [vmem:[%s1738_s1 + $0x38] sm:$0xff]   ;;  %v58_v11 = vld [vmem:[%s1737_s0 + $0x8] sm:$0xff]  ;;  %s1340_s28 = smov [#allocation5]  }
   0xb   :  { %1182 = vmatpush3.bf16.msra.mxu0 %v1283_v3  ;;  %v63_v13 = vunpack.c.l.s8.bf16 %v58_v11  ;;  %v59_v14 = vld [vmem:[%s1737_s0 + $0x10] sm:$0xff]  ;;  %v64_v15 = vunpack.c.h.s8.bf16 %v58_v11  ;;  %v60_v17 = vld [vmem:[%s1737_s0 + $0x18] sm:$0xff]  ;;  %v350_v21 = vld [vmem:[%s1741_s4] sm:$0xff]  ;;  %s1027_s29 = sshll.u32 %s1340_s28, 4  ;;  %s1704_s29 = int_to_ptr.vmem [resolvable:$true] %s1027_s29 }
   0xc   :  { %1183 = vmatprep.subr.bf16.mxu0 %v1284_v4  ;;  %v65_v16 = vunpack.c.l.s8.bf16 %v59_v14  ;;  %v66_v18 = vunpack.c.h.s8.bf16 %v59_v14  ;;  %v67_v19 = vunpack.c.l.s8.bf16 %v60_v17  ;;  %v68_v20 = vunpack.c.h.s8.bf16 %v60_v17  ;;  %1209 = vmatprep.subr.mxu1 %v350_v21  ;;  %v567_v22 = vld [vmem:[%s1743_s6] sm:$0xff]  ;;  %v568_v23 = vld [vmem:[%s1743_s6 + $0x8] sm:$0xff]  ;;  %v71_v25 = vld [vmem:[#allocation2 + $0x10] sm:$0xff] }
   0xd   :  { %1210 = vmatpush3.msra.mxu1 %v350_v21  ;;  %v1267_v24 = vpack.c.bf16 %v568_v23, %v567_v22  ;;  %v69_v26 = vld [vmem:[#allocation2] sm:$0xff]  ;;  %v72_v28 = vld [vmem:[#allocation2 + $0x18] sm:$0xff]  ;;  %v70_v31 = vld [vmem:[#allocation2 + $0x8] sm:$0xff] }
   0xe   :  { %v1086_v37 = vld [vmem:[%s1739_s2] sm:$0xff]   ;;  %v75_v38 = vld [vmem:[#allocation2 + $0x30] sm:$0xff]  ;;  %v76_v41 = vld [vmem:[#allocation2 + $0x38] sm:$0xff] }
   0xf   :  { %1184 = vmatpush3.bf16.msra.mxu0 %v1284_v4  ;;  %1268 = vmatprep.subr.bf16.mxu1 %v1267_v24  ;;  %v73_v39 = vld [vmem:[#allocation2 + $0x20] sm:$0xff]  ;;  %v1087_v42 = vunpack.c.l.bf16 %v1086_v37  ;;  %v1117_v43 = vld [vmem:[%s1739_s2 + $0x8] sm:$0xff]   ;;  %v1088_v49 = vunpack.c.h.bf16 %v1086_v37  ;;  %v569_v54 = vld [vmem:[%s1743_s6 + $0x10] sm:$0xff] }
  0x10   :  { %1185 = vmatprep.subr.bf16.mxu0 %v1285_v7  ;;  %v74_v46 = vld [vmem:[#allocation2 + $0x28] sm:$0xff]  ;;  %v1091_v53 = vunpack.c.l.bf16 %v1117_v43  ;;  %v570_v55 = vld [vmem:[%s1743_s6 + $0x18] sm:$0xff]  ;;  %v1118_v60 = vld [vmem:[%s1739_s2 + $0x10] sm:$0xff]   ;;  %v1092_v63 = vunpack.c.h.bf16 %v1117_v43 }
  0x11   :  { %v79_v61 = vld [vmem:[#allocation2 + $0x50] sm:$0xff]  ;;  %v1271_v0 = vpack.c.bf16 %v570_v55, %v569_v54  ;;  %v77_v1 = vld [vmem:[#allocation2 + $0x40] sm:$0xff]  ;;  %v80_v5 = vld [vmem:[#allocation2 + $0x58] sm:$0xff]  ;;  %v1095_v6 = vunpack.c.l.bf16 %v1118_v60  ;;  %v1096_v14 = vunpack.c.h.bf16 %v1118_v60 }
  0x12   :  { %v1120_v23 = vld [vmem:[%s1739_s2 + $0x20] sm:$0xff]   ;;  %v1123_v55 = vld [vmem:[%s1739_s2 + $0x38] sm:$0xff]  }
  0x13   :  { %1186 = vmatpush3.bf16.msra.mxu0 %v1285_v7  ;;  %v1119_v7 = vld [vmem:[%s1739_s2 + $0x18] sm:$0xff]  }
  0x14   :  { %1187 = vmatprep.subr.bf16.mxu0 %v1286_v8 }
  0x17   :  { %1188 = vmatpush3.bf16.msra.mxu0 %v1286_v8 }
  0x18   :  { %1189 = vmatprep.subr.bf16.mxu0 %v1287_v9 }
  0x1b   :  { %1190 = vmatpush3.bf16.msra.mxu0 %v1287_v9 }
  0x1c   :  { %1191 = vmatprep.subr.bf16.mxu0 %v1288_v10 }
  0x1f   :  { %1192 = vmatpush3.bf16.msra.mxu0 %v1288_v10  ;;  %v78_v10 = vld [vmem:[#allocation2 + $0x48] sm:$0xff] }
  0x22   :  { %1194 = vmatmul.mubr.bf16.vlgmr.msra.gmra.mrb[0].mxu0 %v62_v12 }
  0x23   :  { %1197 = vmatprep.mubr.bf16.mxu0 %v63_v13 }
  0x2a   :  { %1198 = vmatmul.mubr.bf16.gmra.mrb[4].mxu0 %v64_v15 }
  0x2b   :  { %1201 = vmatprep.mubr.bf16.mxu0 %v65_v16 }
  0x32   :  { %1202 = vmatmul.mubr.bf16.gmra.mrb[8].mxu0 %v66_v18  ;;  %v1099_v18 = vunpack.c.l.bf16 %v1119_v7 }
  0x33   :  { %1205 = vmatprep.mubr.bf16.mxu0 %v67_v19 }
  0x3a   :  { %1206 = vmatmul.mubr.bf16.gmra.mrb[12].mxu0 %v68_v20 }
  0xf5   :  { %v1195_v27 = vpop.f32.mrb[0].mxu0 }
  0xf6   :  { %v252_v29 = vadd.f32 %v1195_v27, %v71_v25  ;;  %v187_v30 = vpop.f32.mrb[1].mxu0  ;;  %v81_v27 = vld [vmem:[#allocation2 + $0x60] sm:$0xff] }
  0xf7   :  { %v250_v32 = vadd.f32 %v187_v30, %v69_v26  ;;  %v1196_v33 = vpop.f32.mrb[2].mxu0  ;;  %v1100_v26 = vunpack.c.h.bf16 %v1119_v7  ;;  %v805_v7 = vld [vmem:[%s1740_s3 + $0x8] sm:$0xff] }
  0xf8   :  { %269 = vst.msk [vmem:[#allocation2 + $0x10] sm:$0xff] %vm40_vm0, %v252_v29  ;;  %v253_v34 = vadd.f32 %v1196_v33, %v72_v28  ;;  %v190_v35 = vpop.f32.mrb[3].mxu0  ;;  %v1121_v33 = vld [vmem:[%s1739_s2 + $0x28] sm:$0xff]  }
  0xf9   :  { %267 = vst.msk [vmem:[#allocation2] sm:$0xff] %vm40_vm0, %v250_v32  ;;  %v251_v36 = vadd.f32 %v190_v35, %v70_v31  ;;  %v84_v31 = vld [vmem:[#allocation2 + $0x78] sm:$0xff]  ;;  %v1103_v32 = vunpack.c.l.bf16 %v1120_v23 }
  0xfa   :  { %270 = vst.msk [vmem:[#allocation2 + $0x18] sm:$0xff] %vm40_vm0, %v253_v34 }
  0xfb   :  { %268 = vst.msk [vmem:[#allocation2 + $0x8] sm:$0xff] %vm40_vm0, %v251_v36  ;;  %v82_v36 = vld [vmem:[#allocation2 + $0x68] sm:$0xff] }
  0xfd   :  { %v1199_v40 = vpop.f32.mrb[4].mxu0 }
  0xfe   :  { %v256_v44 = vadd.f32 %v1199_v40, %v75_v38  ;;  %v203_v45 = vpop.f32.mrb[5].mxu0  ;;  %v1104_v40 = vunpack.c.h.bf16 %v1120_v23 }
  0xff   :  { %v254_v47 = vadd.f32 %v203_v45, %v73_v39  ;;  %v1200_v48 = vpop.f32.mrb[6].mxu0  ;;  %v288_v58 = vld [vmem:[#allocation2 + $0x10] sm:$0xff] }
 0x100   :  { %273 = vst.msk [vmem:[#allocation2 + $0x30] sm:$0xff] %vm40_vm0, %v256_v44  ;;  %v257_v50 = vadd.f32 %v1200_v48, %v76_v41  ;;  %v206_v51 = vpop.f32.mrb[7].mxu0  ;;  %v286_v52 = vld [vmem:[#allocation2] sm:$0xff]  ;;  %v336_v2 = vadd.f32 %v1091_v53, %v288_v58  ;;  %v1107_v44 = vunpack.c.l.bf16 %v1121_v33 }
 0x101   :  { %271 = vst.msk [vmem:[#allocation2 + $0x20] sm:$0xff] %vm40_vm0, %v254_v47  ;;  %v255_v56 = vadd.f32 %v206_v51, %v74_v46  ;;  %v334_v57 = vadd.f32 %v1087_v42, %v286_v52  ;;  %v289_v3 = vld [vmem:[#allocation2 + $0x18] sm:$0xff]  ;;  %v1108_v51 = vunpack.c.h.bf16 %v1121_v33 }
 0x102   :  { %274 = vst.msk [vmem:[#allocation2 + $0x38] sm:$0xff] %vm40_vm0, %v257_v50  ;;  %v287_v59 = vld [vmem:[#allocation2 + $0x8] sm:$0xff]  ;;  %v337_v13 = vadd.f32 %v1092_v63, %v289_v3 }
 0x103   :  { %272 = vst.msk [vmem:[#allocation2 + $0x28] sm:$0xff] %vm40_vm0, %v255_v56  ;;  %1211 = vmatprep.mubr.msk.f32.mxu1 %vm40_vm0, %v334_v57  ;;  %v335_v62 = vadd.f32 %v1088_v49, %v287_v59  ;;  %v1122_v49 = vld [vmem:[%s1739_s2 + $0x30] sm:$0xff]   ;;  %v1115_v59 = vunpack.c.l.bf16 %v1123_v55 }
 0x104   :  { %v1111_v54 = vunpack.c.l.bf16 %v1122_v49  ;;  %v1112_v57 = vunpack.c.h.bf16 %v1122_v49 }
 0x105   :  { %v1203_v4 = vpop.f32.mrb[8].mxu0  ;;  %1212 = vmatmul.mubr.msk.f32.vlgmr.msra.gmra.mrb[0].mxu1 %vm40_vm0, %v335_v62 }
 0x106   :  { %v260_v8 = vadd.f32 %v1203_v4, %v79_v61  ;;  %v219_v9 = vpop.f32.mrb[9].mxu0  ;;  %1214 = vmatprep.mubr.msk.f32.mxu1 %vm40_vm0, %v336_v2  ;;  %1270 = vmatpush3.bf16.msra.mxu1 %v1267_v24  ;;  %v83_v24 = vld [vmem:[#allocation2 + $0x70] sm:$0xff]  ;;  %v804_v4 = vld [vmem:[%s1740_s3] sm:$0xff] }
 0x107   :  { %v258_v11 = vadd.f32 %v219_v9, %v77_v1  ;;  %v1204_v12 = vpop.f32.mrb[10].mxu0  ;;  %1272 = vmatprep.subr.bf16.mxu1 %v1271_v0  ;;  %v292_v21 = vld [vmem:[#allocation2 + $0x30] sm:$0xff]  ;;  %v808_v9 = vld [vmem:[%s1740_s3 + $0x20] sm:$0xff] }
 0x108   :  { %277 = vst.msk [vmem:[#allocation2 + $0x50] sm:$0xff] %vm40_vm0, %v260_v8  ;;  %v261_v15 = vadd.f32 %v1204_v12, %v80_v5  ;;  %v222_v16 = vpop.f32.mrb[11].mxu0  ;;  %v290_v17 = vld [vmem:[#allocation2 + $0x20] sm:$0xff]  ;;  %v340_v28 = vadd.f32 %v1099_v18, %v292_v21  ;;  %v806_v5 = vld [vmem:[%s1740_s3 + $0x10] sm:$0xff]  ;;  %v807_v8 = vld [vmem:[%s1740_s3 + $0x18] sm:$0xff] }
 0x109   :  { %275 = vst.msk [vmem:[#allocation2 + $0x40] sm:$0xff] %vm40_vm0, %v258_v11  ;;  %v259_v19 = vadd.f32 %v222_v16, %v78_v10  ;;  %1215 = vmatmul.mubr.msk.f32.gmra.mrb[2].mxu1 %vm40_vm0, %v337_v13  ;;  %v338_v20 = vadd.f32 %v1095_v6, %v290_v17  ;;  %v293_v29 = vld [vmem:[#allocation2 + $0x38] sm:$0xff]  ;;  %v1338_v6 = vmov 0   ;;  %v809_v10 = vld [vmem:[%s1740_s3 + $0x28] sm:$0xff]  ;;  %v810_v11 = vld [vmem:[%s1740_s3 + $0x30] sm:$0xff] }
 0x10a   :  { %278 = vst.msk [vmem:[#allocation2 + $0x58] sm:$0xff] %vm40_vm0, %v261_v15  ;;  %v291_v22 = vld [vmem:[#allocation2 + $0x28] sm:$0xff]  ;;  %1274 = vmatpush3.bf16.msra.mxu1 %v1271_v0  ;;  %v341_v39 = vadd.f32 %v1100_v26, %v293_v29  ;;  %v1116_v0 = vunpack.c.h.bf16 %v1123_v55  ;;  %1279 = vset.pattern.permute.xlu0 %v1338_v6  ;;  %v811_v12 = vld [vmem:[%s1740_s3 + $0x38] sm:$0xff]  ;;  %v812_v13 = vld [vmem:[%s1740_s3 + $0x40] sm:$0xff] }
 0x10b   :  { %276 = vst.msk [vmem:[#allocation2 + $0x48] sm:$0xff] %vm40_vm0, %v259_v19  ;;  %1217 = vmatprep.mubr.msk.f32.mxu1 %vm40_vm0, %v338_v20  ;;  %v339_v25 = vadd.f32 %v1096_v14, %v291_v22  ;;  %1280 = vset.pattern.permute.xlu1 %v1338_v6  ;;  %v813_v14 = vld [vmem:[%s1740_s3 + $0x48] sm:$0xff]  ;;  %v814_v15 = vld [vmem:[%s1740_s3 + $0x50] sm:$0xff]  ;;  %v815_v16 = vld [vmem:[%s1740_s3 + $0x58] sm:$0xff] }
 0x10c   :  { %822 = vperm.xlu0 %1279, %v804_v4   ;;  %832 = vperm.xlu1 %1280, %v806_v5   ;;  %v816_v17 = vld [vmem:[%s1740_s3 + $0x60] sm:$0xff]  ;;  %v817_v18 = vld [vmem:[%s1740_s3 + $0x68] sm:$0xff]  ;;  %v818_v19 = vld [vmem:[%s1740_s3 + $0x70] sm:$0xff] }
 0x10d   :  { %v1207_v30 = vpop.f32.mrb[12].mxu0  ;;  %1218 = vmatmul.mubr.msk.f32.gmra.mrb[4].mxu1 %vm40_vm0, %v339_v25  ;;  %v819_v20 = vld [vmem:[%s1740_s3 + $0x78] sm:$0xff]  ;;  %v1051_v21 = vld [vmem:[%s1742_s5] ss:$0 sm:$0xff] }
 0x10e   :  { %v264_v34 = vadd.f32 %v1207_v30, %v83_v24  ;;  %v235_v35 = vpop.f32.mrb[13].mxu0  ;;  %1220 = vmatprep.mubr.msk.f32.mxu1 %vm40_vm0, %v340_v28 }
 0x10f   :  { %v262_v37 = vadd.f32 %v235_v35, %v81_v27  ;;  %v1208_v38 = vpop.f32.mrb[14].mxu0  ;;  %v296_v47 = vld [vmem:[#allocation2 + $0x50] sm:$0xff] }
 0x110   :  { %281 = vst.msk [vmem:[#allocation2 + $0x70] sm:$0xff] %vm40_vm0, %v264_v34  ;;  %v265_v41 = vadd.f32 %v1208_v38, %v84_v31  ;;  %v238_v42 = vpop.f32.mrb[15].mxu0  ;;  %v294_v43 = vld [vmem:[#allocation2 + $0x40] sm:$0xff]  ;;  %v344_v52 = vadd.f32 %v1107_v44, %v296_v47  ;;  %827 = vperm.xlu0 %1279, %v805_v7   ;;  %837 = vperm.xlu1 %1280, %v807_v8  }
 0x111   :  { %279 = vst.msk [vmem:[#allocation2 + $0x60] sm:$0xff] %vm40_vm0, %v262_v37  ;;  %v263_v45 = vadd.f32 %v238_v42, %v82_v36  ;;  %1221 = vmatmul.mubr.msk.f32.gmra.mrb[6].mxu1 %vm40_vm0, %v341_v39  ;;  %v342_v46 = vadd.f32 %v1103_v32, %v294_v43  ;;  %v297_v53 = vld [vmem:[#allocation2 + $0x58] sm:$0xff] }
 0x112   :  { %282 = vst.msk [vmem:[#allocation2 + $0x78] sm:$0xff] %vm40_vm0, %v265_v41  ;;  %v295_v48 = vld [vmem:[#allocation2 + $0x48] sm:$0xff]  ;;  %v345_v56 = vadd.f32 %v1108_v51, %v297_v53 }
 0x113   :  { %280 = vst.msk [vmem:[#allocation2 + $0x68] sm:$0xff] %vm40_vm0, %v263_v45  ;;  %1223 = vmatprep.mubr.msk.f32.mxu1 %vm40_vm0, %v342_v46  ;;  %v343_v50 = vadd.f32 %v1104_v40, %v295_v48 }
 0x114   :  { %842 = vperm.xlu0 %1279, %v808_v9   ;;  %847 = vperm.xlu1 %1280, %v809_v10   ;;  %v1589_v9 = vld [vmem:[%s1744_s7] ss:$0 sm:$0xff] }
 0x115   :  { %1224 = vmatmul.mubr.msk.f32.gmra.mrb[8].mxu1 %vm40_vm0, %v343_v50 }
 0x116   :  { %1226 = vmatprep.mubr.msk.f32.mxu1 %vm40_vm0, %v344_v52 }
 0x117   :  { %v300_v61 = vld [vmem:[#allocation2 + $0x70] sm:$0xff] }
 0x118   :  { %v298_v58 = vld [vmem:[#allocation2 + $0x60] sm:$0xff]  ;;  %v348_v1 = vadd.f32 %v1115_v59, %v300_v61  ;;  %852 = vperm.xlu0 %1279, %v810_v11   ;;  %857 = vperm.xlu1 %1280, %v811_v12  }
 0x119   :  { %1227 = vmatmul.mubr.msk.f32.gmra.mrb[10].mxu1 %vm40_vm0, %v345_v56  ;;  %v346_v60 = vadd.f32 %v1111_v54, %v298_v58  ;;  %v301_v2 = vld [vmem:[#allocation2 + $0x78] sm:$0xff] }
 0x11a   :  { %v299_v62 = vld [vmem:[#allocation2 + $0x68] sm:$0xff]  ;;  %v349_v3 = vadd.f32 %v1116_v0, %v301_v2 }
 0x11b   :  { %1229 = vmatprep.mubr.msk.f32.mxu1 %vm40_vm0, %v346_v60  ;;  %v347_v63 = vadd.f32 %v1112_v57, %v299_v62 }
 0x11c   :  { %862 = vperm.xlu0 %1279, %v812_v13   ;;  %867 = vperm.xlu1 %1280, %v813_v14  }
 0x11d   :  { %1230 = vmatmul.mubr.msk.f32.gmra.mrb[12].mxu1 %vm40_vm0, %v347_v63 }
 0x11e   :  { %1232 = vmatprep.mubr.msk.f32.mxu1 %vm40_vm0, %v348_v1 }
 0x120   :  { %872 = vperm.xlu0 %1279, %v814_v15   ;;  %877 = vperm.xlu1 %1280, %v815_v16  }
 0x121   :  { %1233 = vmatmul.mubr.msk.f32.gmra.mrb[14].mxu1 %vm40_vm0, %v349_v3 }
 0x124   :  { %882 = vperm.xlu0 %1279, %v816_v17   ;;  %887 = vperm.xlu1 %1280, %v817_v18  }
 0x128   :  { %892 = vperm.xlu0 %1279, %v818_v19   ;;  %897 = vperm.xlu1 %1280, %v819_v20  }
 0x18b   :  { %v833_v6 = vpop.permute.xlu1 %832  ;;  %v823_v7 = vpop.permute.xlu0 %822 }
 0x18f   :  { %v838_v8 = vpop.permute.xlu1 %837  ;;  %v828_v10 = vpop.permute.xlu0 %827 }
 0x193   :  { %v848_v15 = vpop.permute.xlu1 %847  ;;  %v843_v19 = vpop.permute.xlu0 %842 }
 0x1d8   :  { %v1213_v22 = vpop.f32.mrb[0].mxu1 }
 0x1d9   :  { %v478_v23 = vadd.f32 %v1213_v22, %v1051_v21  ;;  %v472_v24 = vpop.f32.mrb[1].mxu1 }
 0x1da   :  { %v473_v25 = vadd.f32 %v1051_v21, %v472_v24 }
 0x1db   :  { %v552_v28 = vmax.f32 %v478_v23, 0.0 }
 0x1dc   :  { %v551_v26 = vmax.f32 %v473_v25, 0.0  ;;  %v1216_v27 = vpop.f32.mrb[2].mxu1 }
 0x1dd   :  { %v488_v29 = vadd.f32 %v1216_v27, %v1051_v21  ;;  %v482_v30 = vpop.f32.mrb[3].mxu1 }
 0x1de   :  { %v483_v31 = vadd.f32 %v1051_v21, %v482_v30  ;;  %1243 = vmatprep.mubr.msk.f32.mxu1 %vm578_vm1, %v551_v26 }
 0x1df   :  { %1244 = vmatmul.mubr.msk.f32.vlgmr.msra.gmra.mrb[16].mxu1 %vm578_vm1, %v552_v28  ;;  %v554_v34 = vmax.f32 %v488_v29, 0.0 }
 0x1e0   :  { %v553_v32 = vmax.f32 %v483_v31, 0.0  ;;  %v1219_v33 = vpop.f32.mrb[4].mxu1 }
 0x1e1   :  { %v498_v35 = vadd.f32 %v1219_v33, %v1051_v21  ;;  %v492_v36 = vpop.f32.mrb[5].mxu1 }
 0x1e2   :  { %v493_v37 = vadd.f32 %v1051_v21, %v492_v36  ;;  %1246 = vmatprep.mubr.msk.f32.mxu1 %vm578_vm1, %v553_v32  ;;  %v858_v32 = vpop.permute.xlu1 %857 }
 0x1e3   :  { %1247 = vmatmul.mubr.msk.f32.gmra.mrb[18].mxu1 %vm578_vm1, %v554_v34  ;;  %v556_v40 = vmax.f32 %v498_v35, 0.0 }
 0x1e4   :  { %v555_v38 = vmax.f32 %v493_v37, 0.0  ;;  %v1222_v39 = vpop.f32.mrb[6].mxu1 }
 0x1e5   :  { %v508_v41 = vadd.f32 %v1222_v39, %v1051_v21  ;;  %v502_v42 = vpop.f32.mrb[7].mxu1 }
 0x1e6   :  { %v503_v43 = vadd.f32 %v1051_v21, %v502_v42  ;;  %1249 = vmatprep.mubr.msk.f32.mxu1 %vm578_vm1, %v555_v38 }
 0x1e7   :  { %1250 = vmatmul.mubr.msk.f32.gmra.mrb[20].mxu1 %vm578_vm1, %v556_v40  ;;  %v558_v46 = vmax.f32 %v508_v41, 0.0  ;;  %v853_v41 = vpop.permute.xlu0 %852 }
 0x1e8   :  { %v557_v44 = vmax.f32 %v503_v43, 0.0  ;;  %v1225_v45 = vpop.f32.mrb[8].mxu1 }
 0x1e9   :  { %v518_v47 = vadd.f32 %v1225_v45, %v1051_v21  ;;  %v512_v48 = vpop.f32.mrb[9].mxu1 }
 0x1ea   :  { %v513_v49 = vadd.f32 %v1051_v21, %v512_v48  ;;  %1252 = vmatprep.mubr.msk.f32.mxu1 %vm578_vm1, %v557_v44 }
 0x1eb   :  { %1253 = vmatmul.mubr.msk.f32.gmra.mrb[22].mxu1 %vm578_vm1, %v558_v46  ;;  %v560_v52 = vmax.f32 %v518_v47, 0.0 }
 0x1ec   :  { %v559_v50 = vmax.f32 %v513_v49, 0.0  ;;  %v1228_v51 = vpop.f32.mrb[10].mxu1 }
 0x1ed   :  { %v528_v53 = vadd.f32 %v1228_v51, %v1051_v21  ;;  %v522_v54 = vpop.f32.mrb[11].mxu1 }
 0x1ee   :  { %v523_v55 = vadd.f32 %v1051_v21, %v522_v54  ;;  %1255 = vmatprep.mubr.msk.f32.mxu1 %vm578_vm1, %v559_v50 }
 0x1ef   :  { %1256 = vmatmul.mubr.msk.f32.gmra.mrb[24].mxu1 %vm578_vm1, %v560_v52  ;;  %v562_v58 = vmax.f32 %v528_v53, 0.0 }
 0x1f0   :  { %v561_v56 = vmax.f32 %v523_v55, 0.0  ;;  %v1231_v57 = vpop.f32.mrb[12].mxu1 }
 0x1f1   :  { %v538_v59 = vadd.f32 %v1231_v57, %v1051_v21  ;;  %v532_v60 = vpop.f32.mrb[13].mxu1  ;;  %v868_v57 = vpop.permute.xlu1 %867 }
 0x1f2   :  { %v533_v61 = vadd.f32 %v1051_v21, %v532_v60  ;;  %1258 = vmatprep.mubr.msk.f32.mxu1 %vm578_vm1, %v561_v56 }
 0x1f3   :  { %1259 = vmatmul.mubr.msk.f32.gmra.mrb[26].mxu1 %vm578_vm1, %v562_v58  ;;  %v564_v0 = vmax.f32 %v538_v59, 0.0 }
 0x1f4   :  { %v563_v62 = vmax.f32 %v533_v61, 0.0  ;;  %v1234_v63 = vpop.f32.mrb[14].mxu1 }
 0x1f5   :  { %v548_v1 = vadd.f32 %v1234_v63, %v1051_v21  ;;  %v542_v2 = vpop.f32.mrb[15].mxu1 }
 0x1f6   :  { %v543_v3 = vadd.f32 %v1051_v21, %v542_v2  ;;  %1261 = vmatprep.mubr.msk.f32.mxu1 %vm578_vm1, %v563_v62 }
 0x1f7   :  { %1262 = vmatmul.mubr.msk.f32.gmra.mrb[28].mxu1 %vm578_vm1, %v564_v0  ;;  %v566_v5 = vmax.f32 %v548_v1, 0.0 }
 0x1f8   :  { %v565_v4 = vmax.f32 %v543_v3, 0.0  ;;  %v863_v3 = vpop.permute.xlu0 %862 }
 0x1fa   :  { %1264 = vmatprep.mubr.msk.f32.mxu1 %vm578_vm1, %v565_v4 }
 0x1fb   :  { %1265 = vmatmul.mubr.msk.f32.gmra.mrb[30].mxu1 %vm578_vm1, %v566_v5 }
 0x2b2   :  { %v1245_v11 = vpop.f32.mrb[16].mxu1 }
 0x2b3   :  { %v699_v12 = vadd.f32 %v1245_v11, %v1589_v9  ;;  %v693_v13 = vpop.f32.mrb[17].mxu1 }
 0x2b4   :  { %v694_v14 = vadd.f32 %v1589_v9, %v693_v13 }
 0x2b5   :  { %v773_v16 = vmax.f32 %v699_v12, 0.0 }
 0x2b6   :  { %v772_v17 = vmax.f32 %v694_v14, 0.0  ;;  %v1248_v18 = vpop.f32.mrb[18].mxu1 }
 0x2b7   :  { %789 = vst.msk [vmem:[%s1745_s8 + $0x8] sm:$0xff] %vm578_vm1, %v773_v16  ;;  %v901_v20 = vmul.f32 %v828_v10, %v773_v16  ;;  %v709_v21 = vadd.f32 %v1248_v18, %v1589_v9  ;;  %v703_v22 = vpop.f32.mrb[19].mxu1 }
 0x2b8   :  { %788 = vst.msk [vmem:[%s1745_s8] sm:$0xff] %vm578_vm1, %v772_v17  ;;  %v900_v23 = vmul.f32 %v823_v7, %v772_v17  ;;  %v704_v24 = vadd.f32 %v1589_v9, %v703_v22  ;;  %v878_v22 = vpop.permute.xlu1 %877 }
 0x2b9   :  { %v917_v25 = vsel %vm578_vm1, %v901_v20, 0.0  ;;  %v956_v26 = vmul.f32 %v901_v20, %v901_v20  ;;  %v775_v27 = vmax.f32 %v709_v21, 0.0 }
 0x2ba   :  { %v916_v28 = vsel %vm578_vm1, %v900_v23, 0.0  ;;  %v955_v29 = vmul.f32 %v900_v23, %v900_v23  ;;  %v774_v30 = vmax.f32 %v704_v24, 0.0  ;;  %v1251_v31 = vpop.f32.mrb[20].mxu1 }
 0x2bb   :  { %v972_v33 = vsel %vm578_vm1, %v956_v26, 0.0  ;;  %v918_v34 = vadd.f32 %v917_v25, %v916_v28  ;;  %791 = vst.msk [vmem:[%s1745_s8 + $0x18] sm:$0xff] %vm578_vm1, %v775_v27  ;;  %v903_v35 = vmul.f32 %v838_v8, %v775_v27  ;;  %v719_v36 = vadd.f32 %v1251_v31, %v1589_v9  ;;  %v713_v37 = vpop.f32.mrb[21].mxu1  ;;  %v873_v31 = vpop.permute.xlu0 %872 }
 0x2bc   :  { %v971_v38 = vsel %vm578_vm1, %v955_v29, 0.0  ;;  %790 = vst.msk [vmem:[%s1745_s8 + $0x10] sm:$0xff] %vm578_vm1, %v774_v30  ;;  %v902_v39 = vmul.f32 %v833_v6, %v774_v30  ;;  %v714_v40 = vadd.f32 %v1589_v9, %v713_v37 }
 0x2bd   :  { %v973_v42 = vadd.f32 %v972_v33, %v971_v38  ;;  %v958_v43 = vmul.f32 %v903_v35, %v903_v35  ;;  %v777_v44 = vmax.f32 %v719_v36, 0.0  ;;  %v921_v53 = vsel %vm578_vm1, %v903_v35, 0.0 }
 0x2be   :  { %v919_v45 = vsel %vm578_vm1, %v902_v39, 0.0  ;;  %v957_v46 = vmul.f32 %v902_v39, %v902_v39  ;;  %v776_v47 = vmax.f32 %v714_v40, 0.0  ;;  %v1254_v48 = vpop.f32.mrb[22].mxu1 }
 0x2bf   :  { %v920_v49 = vadd.f32 %v919_v45, %v918_v34  ;;  %793 = vst.msk [vmem:[%s1745_s8 + $0x28] sm:$0xff] %vm578_vm1, %v777_v44  ;;  %v905_v50 = vmul.f32 %v848_v15, %v777_v44  ;;  %v729_v51 = vadd.f32 %v1254_v48, %v1589_v9  ;;  %v723_v52 = vpop.f32.mrb[23].mxu1  ;;  %v976_v58 = vsel %vm578_vm1, %v958_v43, 0.0 }
 0x2c0   :  { %v974_v54 = vsel %vm578_vm1, %v957_v46, 0.0  ;;  %792 = vst.msk [vmem:[%s1745_s8 + $0x20] sm:$0xff] %vm578_vm1, %v776_v47  ;;  %v904_v55 = vmul.f32 %v843_v19, %v776_v47  ;;  %v724_v56 = vadd.f32 %v1589_v9, %v723_v52 }
 0x2c1   :  { %v975_v59 = vadd.f32 %v974_v54, %v973_v42  ;;  %v960_v60 = vmul.f32 %v905_v50, %v905_v50  ;;  %v922_v61 = vadd.f32 %v921_v53, %v920_v49  ;;  %v779_v0 = vmax.f32 %v729_v51, 0.0  ;;  %v888_v49 = vpop.permute.xlu1 %887 }
 0x2c2   :  { %v923_v62 = vsel %vm578_vm1, %v904_v55, 0.0  ;;  %v959_v63 = vmul.f32 %v904_v55, %v904_v55  ;;  %v778_v1 = vmax.f32 %v724_v56, 0.0  ;;  %v1257_v2 = vpop.f32.mrb[24].mxu1  ;;  %v925_v4 = vsel %vm578_vm1, %v905_v50, 0.0 }
 0x2c3   :  { %v924_v5 = vadd.f32 %v923_v62, %v922_v61  ;;  %v977_v6 = vadd.f32 %v976_v58, %v975_v59  ;;  %v739_v7 = vadd.f32 %v1257_v2, %v1589_v9  ;;  %v733_v8 = vpop.f32.mrb[25].mxu1  ;;  %795 = vst.msk [vmem:[%s1745_s8 + $0x38] sm:$0xff] %vm578_vm1, %v779_v0  ;;  %v907_v11 = vmul.f32 %v858_v32, %v779_v0  ;;  %v883_v58 = vpop.permute.xlu0 %882 }
 0x2c4   :  { %v978_v10 = vsel %vm578_vm1, %v959_v63, 0.0  ;;  %794 = vst.msk [vmem:[%s1745_s8 + $0x30] sm:$0xff] %vm578_vm1, %v778_v1  ;;  %v906_v12 = vmul.f32 %v853_v41, %v778_v1  ;;  %v734_v13 = vadd.f32 %v1589_v9, %v733_v8  ;;  %v980_v17 = vsel %vm578_vm1, %v960_v60, 0.0 }
 0x2c5   :  { %v979_v14 = vadd.f32 %v978_v10, %v977_v6  ;;  %v926_v15 = vadd.f32 %v925_v4, %v924_v5  ;;  %v781_v16 = vmax.f32 %v739_v7, 0.0  ;;  %v962_v18 = vmul.f32 %v907_v11, %v907_v11 }
 0x2c6   :  { %v927_v19 = vsel %vm578_vm1, %v906_v12, 0.0  ;;  %v961_v20 = vmul.f32 %v906_v12, %v906_v12  ;;  %v1260_v21 = vpop.f32.mrb[26].mxu1  ;;  %v780_v26 = vmax.f32 %v734_v13, 0.0  ;;  %v929_v32 = vsel %vm578_vm1, %v907_v11, 0.0  ;;  %v898_v12 = vpop.permute.xlu1 %897 }
 0x2c7   :  { %v928_v23 = vadd.f32 %v927_v19, %v926_v15  ;;  %v981_v24 = vadd.f32 %v980_v17, %v979_v14  ;;  %797 = vst.msk [vmem:[%s1745_s8 + $0x48] sm:$0xff] %vm578_vm1, %v781_v16  ;;  %v909_v25 = vmul.f32 %v868_v57, %v781_v16  ;;  %v743_v27 = vpop.f32.mrb[27].mxu1  ;;  %v749_v29 = vadd.f32 %v1260_v21, %v1589_v9 }
 0x2c8   :  { %v982_v28 = vsel %vm578_vm1, %v961_v20, 0.0  ;;  %v744_v30 = vadd.f32 %v1589_v9, %v743_v27  ;;  %v984_v33 = vsel %vm578_vm1, %v962_v18, 0.0  ;;  %796 = vst.msk [vmem:[%s1745_s8 + $0x40] sm:$0xff] %vm578_vm1, %v780_v26  ;;  %v908_v35 = vmul.f32 %v863_v3, %v780_v26 }
 0x2c9   :  { %v983_v34 = vadd.f32 %v982_v28, %v981_v24  ;;  %v964_v36 = vmul.f32 %v909_v25, %v909_v25  ;;  %v930_v37 = vadd.f32 %v929_v32, %v928_v23  ;;  %v783_v38 = vmax.f32 %v749_v29, 0.0 }
 0x2ca   :  { %v782_v39 = vmax.f32 %v744_v30, 0.0  ;;  %v1263_v40 = vpop.f32.mrb[28].mxu1  ;;  %v931_v41 = vsel %vm578_vm1, %v908_v35, 0.0  ;;  %v963_v42 = vmul.f32 %v908_v35, %v908_v35  ;;  %v933_v50 = vsel %vm578_vm1, %v909_v25, 0.0 }
 0x2cb   :  { %v985_v43 = vadd.f32 %v984_v33, %v983_v34  ;;  %v753_v44 = vpop.f32.mrb[29].mxu1  ;;  %v932_v45 = vadd.f32 %v931_v41, %v930_v37  ;;  %799 = vst.msk [vmem:[%s1745_s8 + $0x58] sm:$0xff] %vm578_vm1, %v783_v38  ;;  %v911_v46 = vmul.f32 %v878_v22, %v783_v38  ;;  %v759_v48 = vadd.f32 %v1263_v40, %v1589_v9 }
 0x2cc   :  { %798 = vst.msk [vmem:[%s1745_s8 + $0x50] sm:$0xff] %vm578_vm1, %v782_v39  ;;  %v910_v47 = vmul.f32 %v873_v31, %v782_v39  ;;  %v986_v51 = vsel %vm578_vm1, %v963_v42, 0.0  ;;  %v754_v52 = vadd.f32 %v1589_v9, %v753_v44  ;;  %v988_v53 = vsel %vm578_vm1, %v964_v36, 0.0 }
 0x2cd   :  { %v987_v54 = vadd.f32 %v986_v51, %v985_v43  ;;  %v966_v55 = vmul.f32 %v911_v46, %v911_v46  ;;  %v934_v56 = vadd.f32 %v933_v50, %v932_v45  ;;  %v785_v61 = vmax.f32 %v759_v48, 0.0 }
 0x2ce   :  { %v1266_v57 = vpop.f32.mrb[30].mxu1  ;;  %v935_v59 = vsel %vm578_vm1, %v910_v47, 0.0  ;;  %v965_v60 = vmul.f32 %v910_v47, %v910_v47  ;;  %v784_v62 = vmax.f32 %v754_v52, 0.0  ;;  %v937_v0 = vsel %vm578_vm1, %v911_v46, 0.0 }
 0x2cf   :  { %v763_v63 = vpop.f32.mrb[31].mxu1  ;;  %v936_v1 = vadd.f32 %v935_v59, %v934_v56  ;;  %v989_v2 = vadd.f32 %v988_v53, %v987_v54  ;;  %v769_v3 = vadd.f32 %v1266_v57, %v1589_v9  ;;  %801 = vst.msk [vmem:[%s1745_s8 + $0x68] sm:$0xff] %vm578_vm1, %v785_v61  ;;  %v913_v5 = vmul.f32 %v888_v49, %v785_v61 }
 0x2d0   :  { %v990_v4 = vsel %vm578_vm1, %v965_v60, 0.0  ;;  %800 = vst.msk [vmem:[%s1745_s8 + $0x60] sm:$0xff] %vm578_vm1, %v784_v62  ;;  %v912_v6 = vmul.f32 %v883_v58, %v784_v62  ;;  %v764_v7 = vadd.f32 %v1589_v9, %v763_v63  ;;  %v992_v13 = vsel %vm578_vm1, %v966_v55, 0.0  ;;  %v893_v9 = vpop.permute.xlu0 %892 }
 0x2d1   :  { %v991_v8 = vadd.f32 %v990_v4, %v989_v2  ;;  %v938_v10 = vadd.f32 %v937_v0, %v936_v1  ;;  %v787_v11 = vmax.f32 %v769_v3, 0.0  ;;  %v968_v14 = vmul.f32 %v913_v5, %v913_v5 }
 0x2d2   :  { %v939_v15 = vsel %vm578_vm1, %v912_v6, 0.0  ;;  %v967_v16 = vmul.f32 %v912_v6, %v912_v6  ;;  %v786_v20 = vmax.f32 %v764_v7, 0.0  ;;  %v941_v22 = vsel %vm578_vm1, %v913_v5, 0.0 }
 0x2d3   :  { %v940_v17 = vadd.f32 %v939_v15, %v938_v10  ;;  %v993_v18 = vadd.f32 %v992_v13, %v991_v8  ;;  %803 = vst.msk [vmem:[%s1745_s8 + $0x78] sm:$0xff] %vm578_vm1, %v787_v11  ;;  %v915_v19 = vmul.f32 %v898_v12, %v787_v11  ;;  %v996_v25 = vsel %vm578_vm1, %v968_v14, 0.0 }
 0x2d4   :  { %v994_v21 = vsel %vm578_vm1, %v967_v16, 0.0  ;;  %802 = vst.msk [vmem:[%s1745_s8 + $0x70] sm:$0xff] %vm578_vm1, %v786_v20  ;;  %v914_v24 = vmul.f32 %v893_v9, %v786_v20  ;;  %s1339_s8 = smov [#allocation3]  }
 0x2d5   :  { %v995_v23 = vadd.f32 %v994_v21, %v993_v18  ;;  %v942_v26 = vadd.f32 %v941_v22, %v940_v17  ;;  %v970_v27 = vmul.f32 %v915_v19, %v915_v19  ;;  %v945_v32 = vsel %vm578_vm1, %v915_v19, 0.0  ;;  %s1017_s27 = sshll.u32 %s1339_s8, 4  ;;  %s1018_s27 = int_to_ptr.vmem [resolvable:$true] %s1017_s27 }
 0x2d6   :  { %v943_v28 = vsel %vm578_vm1, %v914_v24, 0.0  ;;  %v969_v29 = vmul.f32 %v914_v24, %v914_v24  ;;  %s1289_s6 = scalar_lea.vmem %s1018_s27, 16  ;;  %s1293_s30 = scalar_lea.vmem %s1018_s27, 32 }
 0x2d7   :  { %v997_v30 = vadd.f32 %v996_v25, %v995_v23  ;;  %v944_v31 = vadd.f32 %v943_v28, %v942_v26  ;;  %v1000_v36 = vsel %vm578_vm1, %v970_v27, 0.0  ;;  %p1290_p0 = scmp.ne.s32.totalorder %s1018_s27, %s1289_s6  ;;  %p1294_p1 = scmp.lt.s32.totalorder %s1018_s27, %s1018_s27 }
 0x2d8   :  { %v998_v33 = vsel %vm578_vm1, %v969_v29, 0.0  ;;  %p1295_p2 = scmp.lt.s32.totalorder %s1293_s30, %s1289_s6 }
 0x2d9   :  { %v946_v34 = vadd.f32 %v945_v32, %v944_v31  ;;  %v999_v35 = vadd.f32 %v998_v33, %v997_v30 }
 0x2da   :  { %p1296_p3 = por %p1295_p2, %p1294_p1 }
 0x2db   :  { %v947_v37 = vrot.slane %v946_v34, 4  ;;  %v1001_v38 = vadd.f32 %v1000_v36, %v999_v35 }
 0x2dc   :  { %p1297_p4 = pnand %p1296_p3, %p1290_p0 }
 0x2dd   :  { %v948_v39 = vadd.f32 %v947_v37, %v946_v34  ;;  %v1002_v40 = vrot.slane %v1001_v38, 4 }
 0x2df   :  { %v949_v41 = vrot.slane %v948_v39, 2  ;;  %v1003_v42 = vadd.f32 %v1002_v40, %v1001_v38 }
 0x2e1   :  { %v950_v43 = vadd.f32 %v949_v41, %v948_v39  ;;  %v1004_v44 = vrot.slane %v1003_v42, 2 }
 0x2e3   :  { %v951_v45 = vrot.slane %v950_v43, 1  ;;  %v1005_v46 = vadd.f32 %v1004_v44, %v1003_v42 }
 0x2e5   :  { %v952_v47 = vadd.f32 %v951_v45, %v950_v43  ;;  %v1006_v48 = vrot.slane %v1005_v46, 1 }
 0x2e7   :  { %954 = vst.msk [vmem:[#allocation3] sm:$0x1] %vm953_vm2, %v952_v47  ;;  %v1007_v49 = vadd.f32 %v1006_v48, %v1005_v46 }
 0x2e8   :  { %1300 = shalt.err (!%p1297_p4)
}
 0x2e9   :  { %s1301_s13 = scalar_lea.hbm %s1746_s9, 16 }
 0x2ea   :  { %p1302_p5 = scmp.ne.s32.totalorder %s1746_s9, %s1301_s13  ;;  %p1305_p6 = scmp.lt.u32.totalorder %s1301_s13, %s1746_s9 }
 0x2ec   :  { %p1307_p7 = pnand %p1305_p6, %p1302_p5 }
 0x2ee   :  { %1310 = shalt.err (!%p1307_p7)
}
 0x2ef   :  { %1020 = dma.vmem_to_hbm [thread:$0]  %s1018_s27, 16, %s1746_s9, [#allocation4]   ;;  %1008 = vst.msk [vmem:[#allocation5] sm:$0x1] %vm953_vm2, %v1007_v49 }
 0x2f0   :  { %s1311_s18 = scalar_lea.vmem %s1704_s29, 16  ;;  %s1315_s19 = scalar_lea.vmem %s1704_s29, 32 }
 0x2f1   :  { %p1312_p8 = scmp.ne.s32.totalorder %s1704_s29, %s1311_s18  ;;  %p1316_p9 = scmp.lt.s32.totalorder %s1704_s29, %s1704_s29 }
 0x2f2   :  { %p1317_p10 = scmp.lt.s32.totalorder %s1315_s19, %s1311_s18 }
 0x2f4   :  { %p1318_p11 = por %p1317_p10, %p1316_p9 }
 0x2f6   :  { %p1319_p12 = pnand %p1318_p11, %p1312_p8 }
 0x2f8   :  { %1322 = shalt.err (!%p1319_p12)
}
 0x2f9   :  { %s1323_s0 = scalar_lea.hbm %s1747_s10, 16 }
 0x2fa   :  { %p1324_p13 = scmp.ne.s32.totalorder %s1747_s10, %s1323_s0  ;;  %p1327_p0 = scmp.lt.u32.totalorder %s1323_s0, %s1747_s10 }
 0x2fc   :  { %p1329_p1 = pnand %p1327_p0, %p1324_p13 }
 0x2fe   :  { %1332 = shalt.err (!%p1329_p1)
}
 0x2ff   :  { %1030 = dma.vmem_to_hbm [thread:$0]  %s1704_s29, 16, %s1747_s10, [#allocation6]  }
 0x300   :  { %1333 = dma.done.wait [#allocation4], 16  }
 0x301   :  { %1334 = vsyncadd [#allocation4], 4294967280 }
 0x302   :  { %1335 = dma.done.wait [#allocation6], 16  }
 0x303   :  { %1336 = vsyncadd [#allocation6], 4294967280 }
 0x304   :  { %1039 = vsyncpa [#allocation4], 1 }
 0x305   :  { %1040 = vsyncpa [#allocation6], 1 }

</bundles_post_ra>
